<compile_context>
chip_gen: v5e
topology: v5e:2x2
jax: 0.10.0
libtpu: 0.0.40
codegen_flags: <defaults>
</compile_context>

<pallas_src>
import math

import jax
import jax.numpy as jnp
import numpy as np
from jax.experimental import pallas as pl
from jax.experimental.pallas import tpu as pltpu


_KEY_SENTINEL = np.int32(np.iinfo(np.int32).max)


def _round_up(x, m):
    return ((x + m - 1) // m) * m


def _default_block_rows():
    # v6e/v7x have 256-wide MXUs -> TM=256; v5e (4x128x128 MXU) stays at 128.
    try:
        kind = jax.devices()[0].device_kind.lower()
    except Exception:
        return 128
    return 128 if ("v5 lite" in kind or "v5e" in kind) else 256


def _vmem_limit_bytes():
    # ~75% of the chip's VMEM (about 96 MiB on v5e/v6e, 48 MiB on v7x), with a
    # conservative fallback if the query is unavailable.
    try:
        cap = pltpu.get_tpu_info().vmem_capacity_bytes
    except Exception:
        cap = 64 * 1024 * 1024
    return int(cap) * 3 // 4


def _silhouette_kernel(f_row_ref, f_col_ref, lab_col_ref, lab_row_ref,
                       sq_col_ref, sq_row_ref, onehot_ref,
                       s_ref,
                       sums_ref, cnts_ref, minv_ref, key_ref):
    tm = f_row_ref.shape[0]
    tn = f_col_ref.shape[0]
    kpad = onehot_ref.shape[1]

    c = pl.program_id(1)

    # ---- init per-row-block accumulators on the first column tile ----
    @pl.when(c == 0)
    def _init():
        sums_ref[...] = jnp.zeros_like(sums_ref)
        cnts_ref[...] = jnp.zeros_like(cnts_ref)
        minv_ref[...] = jnp.full_like(minv_ref, jnp.inf)
        key_ref[...] = jnp.full_like(key_ref, _KEY_SENTINEL)

    lab_c = lab_col_ref[...]                    # (TM, 1) int32, -1 for padded rows
    lab_r = lab_row_ref[...]                    # (1, TN) int32, -1 for padded cols
    sq_c = sq_col_ref[...]                      # (TM, 1) f32  ||x_i||^2
    sq_r = sq_row_ref[...]                      # (1, TN) f32  ||x_j||^2

    # ---- pairwise squared distances for this tile (MXU gram, bf16 operands) ----
    gram = jax.lax.dot_general(
        f_row_ref[...], f_col_ref[...], (((1,), (1,)), ((), ())),
        preferred_element_type=jnp.float32)     # (TM, TN) f32

    row_idx = (pl.program_id(0) * tm
               + jax.lax.broadcasted_iota(jnp.int32, (tm, 1), 0))   # (TM, 1)
    jj = jax.lax.broadcasted_iota(jnp.int32, (tm, tn), 1)           # local column
    diag = (c * tn + jj) == row_idx

    d2 = sq_c + sq_r - 2.0 * gram
    d2 = jnp.where(diag, 0.0, jnp.maximum(d2, 0.0))   # exact zero self-distance
    nonzero = d2 > 0.0                                # reference's "dist != 0" filter
    dist = jnp.sqrt(d2)

    valid = lab_r >= 0                                # real (non-padded) columns

    # ---- per-cluster distance sums & nonzero counts (one-hot MXU matmul) ----
    onehot = onehot_ref[...]                          # (TN, Kpad) f32, padded cols = 0
    dims = (((1,), (0,)), ((), ()))
    sums_ref[...] += jax.lax.dot_general(
        dist, onehot, dims, preferred_element_type=jnp.float32)
    cnts_ref[...] += jax.lax.dot_general(
        jnp.where(nonzero, 1.0, 0.0), onehot, dims,
        preferred_element_type=jnp.float32)

    # ---- running first-index argmin over other-cluster columns (on d^2) ----
    other = jnp.logical_and(lab_c != lab_r, valid)
    masked = jnp.where(other, d2, jnp.float32(jnp.inf))
    tile_min = jnp.min(masked, axis=1, keepdims=True)                # (TM, 1)
    is_min = jnp.logical_and(masked == tile_min, valid)
    keys = jnp.where(is_min, (jj << 16) | lab_r, _KEY_SENTINEL)
    tile_key = jnp.min(keys, axis=1, keepdims=True)                  # (TM, 1)

    run_min = minv_ref[...]
    run_key = key_ref[...]
    # Strict "<" keeps the earlier (smaller-index) tile on exact ties; the
    # sentinel check only fires on the very first contributing tile.
    take = jnp.logical_or(tile_min < run_min, run_key == _KEY_SENTINEL)
    minv_ref[...] = jnp.minimum(run_min, tile_min)
    key_ref[...] = jnp.where(take, tile_key, run_key)

    # ---- last column tile: gather a_i / b_i and emit the silhouette ----
    @pl.when(c == pl.num_programs(1) - 1)
    def _finalize():
        near_lab = key_ref[...] & jnp.int32(0xFFFF)                  # (TM, 1)
        kio = jax.lax.broadcasted_iota(jnp.int32, (tm, kpad), 1)
        sums = sums_ref[...]
        cnts = cnts_ref[...]
        own = kio == lab_c
        near = kio == near_lab
        a_sum = jnp.sum(jnp.where(own, sums, 0.0), axis=1, keepdims=True)
        a_cnt = jnp.sum(jnp.where(own, cnts, 0.0), axis=1, keepdims=True)
        b_sum = jnp.sum(jnp.where(near, sums, 0.0), axis=1, keepdims=True)
        b_cnt = jnp.sum(jnp.where(near, cnts, 0.0), axis=1, keepdims=True)
        a = a_sum / a_cnt
        b = b_sum / b_cnt
        s_ref[...] = (b - a) / jnp.maximum(a, b)


def silhouette_loss(features, labels, *, block_rows=None, block_cols=2048,
                    gram_dtype=jnp.bfloat16, num_clusters=None):
    """Negative mean silhouette coefficient (matches SilhouetteLoss.forward).

    features: (N, D) float; labels: (N,) ints in [0, 2^16).
    gram_dtype: dtype of the MXU gram operands (bf16 by default, jnp.float32
      for full-precision distances); all mask/distance/reduction math is f32.
    num_clusters: optional static max(labels)+1 (read eagerly if omitted).
    """
    features = jnp.asarray(features, jnp.float32)
    labels = jnp.asarray(labels, jnp.int32)
    n, d = features.shape

    if num_clusters is None:
        lab_host = np.asarray(jax.device_get(labels))
        assert lab_host.min() >= 0, "labels must be non-negative"
        num_clusters = int(lab_host.max()) + 1
    assert 0 < num_clusters <= (1 << 16), "labels must lie in [0, 2^16)"
    k_pad = _round_up(num_clusters, 128)

    if block_rows is None:
        block_rows = _default_block_rows()

    sub = 8 if np.dtype(gram_dtype).itemsize >= 4 else 16   # bf16 sublane packing
    tm = _round_up(min(block_rows, n), sub)
    if n <= block_cols:
        n_pad = _round_up(n, tm)
        tn = n_pad                              # single column tile
    else:
        tn = _round_up(min(block_cols, n), 128)
        n_pad = _round_up(n, math.lcm(tm, tn))
    assert tn <= (1 << 15), "packed argmin key needs column tiles <= 32768"

    n_row_blocks = n_pad // tm
    n_col_blocks = n_pad // tn

    pad = n_pad - n
    fp = jnp.pad(features, ((0, pad), (0, 0)))            # padded rows are zero
    lp = jnp.pad(labels, (0, pad), constant_values=-1)    # sentinel label
    sq = jnp.sum(fp * fp, axis=-1)                        # f32 squared norms (once)

    f_gram = fp.astype(gram_dtype)                        # MXU operands only
    lab_col = lp.reshape(n_pad, 1)
    lab_row = lp.reshape(1, n_pad)
    sq_col = sq.reshape(n_pad, 1)
    sq_row = sq.reshape(1, n_pad)
    onehot = (lp[:, None] == jnp.arange(k_pad, dtype=jnp.int32)[None, :]
              ).astype(jnp.float32)                       # (N_pad, Kpad)

    # Single-buffer blocks whose block index never changes over the grid.
    row_mode = pl.Buffered(1) if n_row_blocks == 1 else None
    col_mode = pl.Buffered(1) if n_col_blocks == 1 else None

    s = pl.pallas_call(
        _silhouette_kernel,
        out_shape=jax.ShapeDtypeStruct((n_pad, 1), jnp.float32),
        grid=(n_row_blocks, n_col_blocks),
        in_specs=[
            pl.BlockSpec((tm, d), lambda i, c: (i, 0), pipeline_mode=row_mode),
            pl.BlockSpec((tn, d), lambda i, c: (c, 0), pipeline_mode=col_mode),
            pl.BlockSpec((tm, 1), lambda i, c: (i, 0), pipeline_mode=row_mode),
            pl.BlockSpec((1, tn), lambda i, c: (0, c), pipeline_mode=col_mode),
            pl.BlockSpec((tm, 1), lambda i, c: (i, 0), pipeline_mode=row_mode),
            pl.BlockSpec((1, tn), lambda i, c: (0, c), pipeline_mode=col_mode),
            pl.BlockSpec((tn, k_pad), lambda i, c: (c, 0), pipeline_mode=col_mode),
        ],
        out_specs=pl.BlockSpec((tm, 1), lambda i, c: (i, 0)),
        scratch_shapes=[
            pltpu.VMEM((tm, k_pad), jnp.float32),   # per-cluster distance sums
            pltpu.VMEM((tm, k_pad), jnp.float32),   # per-cluster nonzero counts
            pltpu.VMEM((tm, 1), jnp.float32),       # running min d^2 (other clusters)
            pltpu.VMEM((tm, 1), jnp.int32),         # running packed argmin key
        ],
        compiler_params=pltpu.CompilerParams(
            dimension_semantics=("parallel", "arbitrary"),
            vmem_limit_bytes=_vmem_limit_bytes(),
        ),
    )(f_gram, f_gram, lab_col, lab_row, sq_col, sq_row, onehot)

    return -jnp.mean(s[:n, 0])


def _ref_loss_np(features, labels):
    """NumPy float64 re-implementation of the PyTorch reference."""
    f = np.asarray(features, dtype=np.float64)
    lab = np.asarray(labels)
    n = f.shape[0]
    dist = np.sqrt(((f[:, None, :] - f[None, :, :]) ** 2).sum(-1))
    a_list, b_list = [], []
    for i in range(n):
        di = dist[i]
        same = lab == lab[i]
        intra = di[same]
        intra = intra[intra != 0]
        a_list.append(intra.mean())
        masked = np.where(~same, di, np.inf)
        nearest = int(np.argmin(masked))
        nd = di[lab == lab[nearest]]
        nd = nd[nd != 0]
        b_list.append(nd.mean())
    a = np.array(a_list)
    b = np.array(b_list)
    s = (b - a) / np.maximum(a, b)
    return -s.mean()


def _make_data(key, n, d, n_clusters, scale=4.0):
    kc, kf = jax.random.split(key)
    labels = jnp.arange(n, dtype=jnp.int32) % n_clusters
    centers = jax.random.normal(kc, (n_clusters, d), dtype=jnp.float32) * scale
    feats = centers[labels] + jax.random.normal(kf, (n, d), dtype=jnp.float32)
    return feats, labels


if __name__ == "__main__":
    key = jax.random.PRNGKey(0)
    k1, k2, k3, k4 = jax.random.split(key, 4)

    # Case 1: tiny (N=8, D=32), single tile, default bf16 gram.
    f1, l1 = _make_data(k1, 8, 32, 3)
    out1 = jax.block_until_ready(silhouette_loss(f1, l1))
    ref1 = _ref_loss_np(np.asarray(f1), np.asarray(l1))
    np.testing.assert_allclose(float(out1), float(ref1), rtol=2e-2, atol=2e-3)

    # Case 2: N=10, D=16 -> exercises row/column padding with sentinel labels.
    f2, l2 = _make_data(k2, 10, 16, 3)
    out2 = jax.block_until_ready(silhouette_loss(f2, l2))
    ref2 = _ref_loss_np(np.asarray(f2), np.asarray(l2))
    np.testing.assert_allclose(float(out2), float(ref2), rtol=2e-2, atol=2e-3)

    # Case 3: N=256, D=32, f32 gram, 4x2 (row x column) tile grid -> checks the
    # cross-tile accumulator / argmin-merge logic with f32 distances.
    f3, l3 = _make_data(k3, 256, 32, 5)
    out3 = jax.block_until_ready(
        silhouette_loss(f3, l3, block_rows=64, block_cols=128,
                        gram_dtype=jnp.float32))
    ref3 = _ref_loss_np(np.asarray(f3), np.asarray(l3))
    np.testing.assert_allclose(float(out3), float(ref3), rtol=2e-2, atol=2e-3)

    # Case 4: N=192, bf16 gram, 8x2 tile grid with padded columns in the last
    # column tile and padded rows in the last row blocks.
    f4, l4 = _make_data(k4, 192, 24, 4)
    out4 = jax.block_until_ready(
        silhouette_loss(f4, l4, block_rows=32, block_cols=128))
    ref4 = _ref_loss_np(np.asarray(f4), np.asarray(l4))
    np.testing.assert_allclose(float(out4), float(ref4), rtol=2e-2, atol=2e-3)

    for o in (out1, out2, out3, out4):
        assert np.isfinite(float(o)), "non-finite loss"

    print("KERNEL_OK")
</pallas_src>

<mosaic_0001>
module attributes {stable_mosaic.version = 11 : i64} {
  func.func @_silhouette_kernel(%arg0: i32, %arg1: i32, %arg2: memref<16x32xbf16, #tpu.memory_space<vmem>>, %arg3: memref<16x32xbf16, #tpu.memory_space<vmem>>, %arg4: memref<16x1xi32, #tpu.memory_space<vmem>>, %arg5: memref<1x16xi32, #tpu.memory_space<vmem>>, %arg6: memref<16x1xf32, #tpu.memory_space<vmem>>, %arg7: memref<1x16xf32, #tpu.memory_space<vmem>>, %arg8: memref<16x128xf32, #tpu.memory_space<vmem>>, %arg9: memref<16x1xf32, #tpu.memory_space<vmem>>, %arg10: memref<16x128xf32, #tpu.memory_space<vmem>>, %arg11: memref<16x128xf32, #tpu.memory_space<vmem>>, %arg12: memref<16x1xf32, #tpu.memory_space<vmem>>, %arg13: memref<16x1xi32, #tpu.memory_space<vmem>>) attributes {dimension_semantics = [#tpu.dimension_semantics<parallel>, #tpu.dimension_semantics<arbitrary>], iteration_bounds = array<i64: 1, 1>, scalar_prefetch = 0 : i64, scratch_operands = 4 : i64, tpu.core_type = #tpu.core_type<tc>, window_params = [{pipeline_mode = #tpu.pipeline_mode<synchronous>, transform_indices = @transform_0, window_bounds = array<i64: 16, 32>}, {pipeline_mode = #tpu.pipeline_mode<synchronous>, transform_indices = @transform_1, window_bounds = array<i64: 16, 32>}, {pipeline_mode = #tpu.pipeline_mode<synchronous>, transform_indices = @transform_2, window_bounds = array<i64: 16, 1>}, {pipeline_mode = #tpu.pipeline_mode<synchronous>, transform_indices = @transform_3, window_bounds = array<i64: 1, 16>}, {pipeline_mode = #tpu.pipeline_mode<synchronous>, transform_indices = @transform_4, window_bounds = array<i64: 16, 1>}, {pipeline_mode = #tpu.pipeline_mode<synchronous>, transform_indices = @transform_5, window_bounds = array<i64: 1, 16>}, {pipeline_mode = #tpu.pipeline_mode<synchronous>, transform_indices = @transform_6, window_bounds = array<i64: 16, 128>}, {transform_indices = @transform_7, window_bounds = array<i64: 16, 1>}]} {
    %c0_i32 = arith.constant 0 : i32
    %0 = arith.cmpi eq, %arg1, %c0_i32 : i32
    %1 = arith.extui %0 : i1 to i32
    %c0_i32_0 = arith.constant 0 : i32
    %2 = arith.cmpi ne, %1, %c0_i32_0 : i32
    scf.if %2 {
      %cst_47 = arith.constant 0.000000e+00 : f32
      %81 = vector.broadcast %cst_47 : f32 to vector<16x128xf32>
      %c0_48 = arith.constant 0 : index
      %c0_49 = arith.constant 0 : index
      %82 = vector.load %arg10[%c0_48, %c0_49] : memref<16x128xf32, #tpu.memory_space<vmem>>, vector<16x128xf32>
      tpu.vector_store %arg10[%c0_48, %c0_49], %81 {strides = array<i32>} : memref<16x128xf32, #tpu.memory_space<vmem>>, vector<16x128xf32>,
      %cst_50 = arith.constant 0.000000e+00 : f32
      %83 = vector.broadcast %cst_50 : f32 to vector<16x128xf32>
      %c0_51 = arith.constant 0 : index
      %c0_52 = arith.constant 0 : index
      %84 = vector.load %arg11[%c0_51, %c0_52] : memref<16x128xf32, #tpu.memory_space<vmem>>, vector<16x128xf32>
      tpu.vector_store %arg11[%c0_51, %c0_52], %83 {strides = array<i32>} : memref<16x128xf32, #tpu.memory_space<vmem>>, vector<16x128xf32>,
      %cst_53 = arith.constant 0x7F800000 : f32
      %85 = vector.broadcast %cst_53 : f32 to vector<16x1xf32>
      %c0_54 = arith.constant 0 : index
      %c0_55 = arith.constant 0 : index
      %86 = vector.load %arg12[%c0_54, %c0_55] : memref<16x1xf32, #tpu.memory_space<vmem>>, vector<16x1xf32>
      tpu.vector_store %arg12[%c0_54, %c0_55], %85 {strides = array<i32>} : memref<16x1xf32, #tpu.memory_space<vmem>>, vector<16x1xf32>,
      %c2147483647_i32_56 = arith.constant 2147483647 : i32
      %87 = vector.broadcast %c2147483647_i32_56 : i32 to vector<16x1xi32>
      %c0_57 = arith.constant 0 : index
      %c0_58 = arith.constant 0 : index
      %88 = vector.load %arg13[%c0_57, %c0_58] : memref<16x1xi32, #tpu.memory_space<vmem>>, vector<16x1xi32>
      tpu.vector_store %arg13[%c0_57, %c0_58], %87 {strides = array<i32>} : memref<16x1xi32, #tpu.memory_space<vmem>>, vector<16x1xi32>,
    } else {
    }
    %c0 = arith.constant 0 : index
    %c0_1 = arith.constant 0 : index
    %3 = vector.load %arg4[%c0, %c0_1] : memref<16x1xi32, #tpu.memory_space<vmem>>, vector<16x1xi32>
    %c0_2 = arith.constant 0 : index
    %c0_3 = arith.constant 0 : index
    %4 = vector.load %arg5[%c0_2, %c0_3] : memref<1x16xi32, #tpu.memory_space<vmem>>, vector<1x16xi32>
    %c0_4 = arith.constant 0 : index
    %c0_5 = arith.constant 0 : index
    %5 = vector.load %arg6[%c0_4, %c0_5] : memref<16x1xf32, #tpu.memory_space<vmem>>, vector<16x1xf32>
    %c0_6 = arith.constant 0 : index
    %c0_7 = arith.constant 0 : index
    %6 = vector.load %arg7[%c0_6, %c0_7] : memref<1x16xf32, #tpu.memory_space<vmem>>, vector<1x16xf32>
    %c0_8 = arith.constant 0 : index
    %c0_9 = arith.constant 0 : index
    %7 = vector.load %arg2[%c0_8, %c0_9] : memref<16x32xbf16, #tpu.memory_space<vmem>>, vector<16x32xbf16>
    %c0_10 = arith.constant 0 : index
    %c0_11 = arith.constant 0 : index
    %8 = vector.load %arg3[%c0_10, %c0_11] : memref<16x32xbf16, #tpu.memory_space<vmem>>, vector<16x32xbf16>
    %cst = arith.constant dense<0.000000e+00> : vector<16x16xf32>
    %9 = tpu.matmul %7, %8, %cst {dimension_numbers = #tpu.dot_dimension_numbers<[1], [1], [0], [0], [0, 0, 1, 0], [], []>} : vector<16x32xbf16>, vector<16x32xbf16>, vector<16x16xf32> -> vector<16x16xf32>
    %c16_i32 = arith.constant 16 : i32
    %10 = arith.muli %arg0, %c16_i32 : i32
    %11 = tpu.iota {dimensions = array<i32: 0>} : vector<16x1xi32>
    %12 = vector.broadcast %10 : i32 to vector<16x1xi32>
    %13 = arith.addi %12, %11 : vector<16x1xi32>
    %14 = tpu.iota {dimensions = array<i32: 1>} : vector<16x16xi32>
    %c16_i32_12 = arith.constant 16 : i32
    %15 = arith.muli %arg1, %c16_i32_12 : i32
    %16 = vector.broadcast %15 : i32 to vector<16x16xi32>
    %17 = arith.addi %16, %14 : vector<16x16xi32>
    %18 = vector.broadcast %13 : vector<16x1xi32> to vector<16x16xi32>
    %19 = arith.cmpi eq, %17, %18 : vector<16x16xi32>
    %20 = vector.broadcast %5 : vector<16x1xf32> to vector<16x16xf32>
    %21 = vector.broadcast %6 : vector<1x16xf32> to vector<16x16xf32>
    %22 = arith.addf %20, %21 : vector<16x16xf32>
    %cst_13 = arith.constant 2.000000e+00 : f32
    %23 = vector.broadcast %cst_13 : f32 to vector<16x16xf32>
    %24 = arith.mulf %23, %9 : vector<16x16xf32>
    %25 = arith.subf %22, %24 : vector<16x16xf32>
    %cst_14 = arith.constant 0.000000e+00 : f32
    %26 = vector.broadcast %cst_14 : f32 to vector<16x16xf32>
    %27 = arith.maximumf %25, %26 : vector<16x16xf32>
    %cst_15 = arith.constant 0.000000e+00 : f32
    %28 = vector.broadcast %cst_15 : f32 to vector<16x16xf32>
    %29 = arith.select %19, %28, %27 : vector<16x16xi1>, vector<16x16xf32>
    %cst_16 = arith.constant 0.000000e+00 : f32
    %30 = vector.broadcast %cst_16 : f32 to vector<16x16xf32>
    %31 = arith.cmpf ogt, %29, %30 : vector<16x16xf32>
    %32 = math.sqrt %29 : vector<16x16xf32>
    %c0_i32_17 = arith.constant 0 : i32
    %33 = vector.broadcast %c0_i32_17 : i32 to vector<1x16xi32>
    %34 = arith.cmpi sge, %4, %33 : vector<1x16xi32>
    %c0_18 = arith.constant 0 : index
    %c0_19 = arith.constant 0 : index
    %35 = vector.load %arg8[%c0_18, %c0_19] : memref<16x128xf32, #tpu.memory_space<vmem>>, vector<16x128xf32>
    %c0_20 = arith.constant 0 : index
    %c0_21 = arith.constant 0 : index
    %36 = vector.load %arg10[%c0_20, %c0_21] : memref<16x128xf32, #tpu.memory_space<vmem>>, vector<16x128xf32>
    %cst_22 = arith.constant dense<0.000000e+00> : vector<16x128xf32>
    %37 = tpu.matmul %32, %35, %cst_22 {dimension_numbers = #tpu.dot_dimension_numbers<[1], [0], [0], [1], [0, 0, 1, 1], [], []>} : vector<16x16xf32>, vector<16x128xf32>, vector<16x128xf32> -> vector<16x128xf32>
    %38 = arith.addf %36, %37 : vector<16x128xf32>
    %c0_23 = arith.constant 0 : index
    %c0_24 = arith.constant 0 : index
    %39 = vector.load %arg10[%c0_23, %c0_24] : memref<16x128xf32, #tpu.memory_space<vmem>>, vector<16x128xf32>
    tpu.vector_store %arg10[%c0_23, %c0_24], %38 {strides = array<i32>} : memref<16x128xf32, #tpu.memory_space<vmem>>, vector<16x128xf32>,
    %c0_25 = arith.constant 0 : index
    %c0_26 = arith.constant 0 : index
    %40 = vector.load %arg11[%c0_25, %c0_26] : memref<16x128xf32, #tpu.memory_space<vmem>>, vector<16x128xf32>
    %cst_27 = arith.constant 1.000000e+00 : f32
    %cst_28 = arith.constant 0.000000e+00 : f32
    %41 = vector.broadcast %cst_27 : f32 to vector<16x16xf32>
    %42 = vector.broadcast %cst_28 : f32 to vector<16x16xf32>
    %43 = arith.select %31, %41, %42 : vector<16x16xi1>, vector<16x16xf32>
    %cst_29 = arith.constant dense<0.000000e+00> : vector<16x128xf32>
    %44 = tpu.matmul %43, %35, %cst_29 {dimension_numbers = #tpu.dot_dimension_numbers<[1], [0], [0], [1], [0, 0, 1, 1], [], []>} : vector<16x16xf32>, vector<16x128xf32>, vector<16x128xf32> -> vector<16x128xf32>
    %45 = arith.addf %40, %44 : vector<16x128xf32>
    %c0_30 = arith.constant 0 : index
    %c0_31 = arith.constant 0 : index
    %46 = vector.load %arg11[%c0_30, %c0_31] : memref<16x128xf32, #tpu.memory_space<vmem>>, vector<16x128xf32>
    tpu.vector_store %arg11[%c0_30, %c0_31], %45 {strides = array<i32>} : memref<16x128xf32, #tpu.memory_space<vmem>>, vector<16x128xf32>,
    %47 = vector.broadcast %3 : vector<16x1xi32> to vector<16x16xi32>
    %48 = vector.broadcast %4 : vector<1x16xi32> to vector<16x16xi32>
    %49 = arith.cmpi ne, %47, %48 : vector<16x16xi32>
    %50 = vector.broadcast %34 : vector<1x16xi1> to vector<16x16xi1>
    %51 = arith.andi %49, %50 : vector<16x16xi1>
    %cst_32 = arith.constant 0x7F800000 : f32
    %52 = vector.broadcast %cst_32 : f32 to vector<16x16xf32>
    %53 = arith.select %51, %29, %52 : vector<16x16xi1>, vector<16x16xf32>
    %cst_33 = arith.constant dense<0x7F800000> : vector<16xf32>
    %54 = vector.multi_reduction <minimumf>, %53, %cst_33 [1] : vector<16x16xf32> to vector<16xf32>
    %55 = vector.shape_cast %54 : vector<16xf32> to vector<16x1xf32>
    %56 = vector.broadcast %55 : vector<16x1xf32> to vector<16x16xf32>
    %57 = arith.cmpf oeq, %53, %56 : vector<16x16xf32>
    %58 = vector.broadcast %34 : vector<1x16xi1> to vector<16x16xi1>
    %59 = arith.andi %57, %58 : vector<16x16xi1>
    %c16_i32_34 = arith.constant 16 : i32
    %60 = vector.broadcast %c16_i32_34 : i32 to vector<16x16xi32>
    %61 = arith.shli %14, %60 : vector<16x16xi32>
    %62 = vector.broadcast %4 : vector<1x16xi32> to vector<16x16xi32>
    %63 = arith.ori %61, %62 : vector<16x16xi32>
    %c2147483647_i32 = arith.constant 2147483647 : i32
    %64 = vector.broadcast %c2147483647_i32 : i32 to vector<16x16xi32>
    %65 = arith.select %59, %63, %64 : vector<16x16xi1>, vector<16x16xi32>
    %cst_35 = arith.constant dense<2147483647> : vector<16xi32>
    %66 = vector.multi_reduction <minsi>, %65, %cst_35 [1] : vector<16x16xi32> to vector<16xi32>
    %67 = vector.shape_cast %66 : vector<16xi32> to vector<16x1xi32>
    %c0_36 = arith.constant 0 : index
    %c0_37 = arith.constant 0 : index
    %68 = vector.load %arg12[%c0_36, %c0_37] : memref<16x1xf32, #tpu.memory_space<vmem>>, vector<16x1xf32>
    %c0_38 = arith.constant 0 : index
    %c0_39 = arith.constant 0 : index
    %69 = vector.load %arg13[%c0_38, %c0_39] : memref<16x1xi32, #tpu.memory_space<vmem>>, vector<16x1xi32>
    %70 = arith.cmpf olt, %55, %68 : vector<16x1xf32>
    %c2147483647_i32_40 = arith.constant 2147483647 : i32
    %71 = vector.broadcast %c2147483647_i32_40 : i32 to vector<16x1xi32>
    %72 = arith.cmpi eq, %69, %71 : vector<16x1xi32>
    %73 = arith.ori %70, %72 : vector<16x1xi1>
    %74 = arith.minimumf %68, %55 : vector<16x1xf32>
    %c0_41 = arith.constant 0 : index
    %c0_42 = arith.constant 0 : index
    %75 = vector.load %arg12[%c0_41, %c0_42] : memref<16x1xf32, #tpu.memory_space<vmem>>, vector<16x1xf32>
    tpu.vector_store %arg12[%c0_41, %c0_42], %74 {strides = array<i32>} : memref<16x1xf32, #tpu.memory_space<vmem>>, vector<16x1xf32>,
    %76 = arith.select %73, %67, %69 : vector<16x1xi1>, vector<16x1xi32>
    %c0_43 = arith.constant 0 : index
    %c0_44 = arith.constant 0 : index
    %77 = vector.load %arg13[%c0_43, %c0_44] : memref<16x1xi32, #tpu.memory_space<vmem>>, vector<16x1xi32>
    tpu.vector_store %arg13[%c0_43, %c0_44], %76 {strides = array<i32>} : memref<16x1xi32, #tpu.memory_space<vmem>>, vector<16x1xi32>,
    %c0_i32_45 = arith.constant 0 : i32
    %78 = arith.cmpi eq, %arg1, %c0_i32_45 : i32
    %79 = arith.extui %78 : i1 to i32
    %c0_i32_46 = arith.constant 0 : i32
    %80 = arith.cmpi ne, %79, %c0_i32_46 : i32
    scf.if %80 {
      %c0_47 = arith.constant 0 : index
      %c0_48 = arith.constant 0 : index
      %81 = vector.load %arg13[%c0_47, %c0_48] : memref<16x1xi32, #tpu.memory_space<vmem>>, vector<16x1xi32>
      %c65535_i32 = arith.constant 65535 : i32
      %82 = vector.broadcast %c65535_i32 : i32 to vector<16x1xi32>
      %83 = arith.andi %81, %82 : vector<16x1xi32>
      %84 = tpu.iota {dimensions = array<i32: 1>} : vector<16x128xi32>
      %c0_49 = arith.constant 0 : index
      %c0_50 = arith.constant 0 : index
      %85 = vector.load %arg10[%c0_49, %c0_50] : memref<16x128xf32, #tpu.memory_space<vmem>>, vector<16x128xf32>
      %c0_51 = arith.constant 0 : index
      %c0_52 = arith.constant 0 : index
      %86 = vector.load %arg11[%c0_51, %c0_52] : memref<16x128xf32, #tpu.memory_space<vmem>>, vector<16x128xf32>
      %87 = vector.broadcast %3 : vector<16x1xi32> to vector<16x128xi32>
      %88 = arith.cmpi eq, %84, %87 : vector<16x128xi32>
      %89 = vector.broadcast %83 : vector<16x1xi32> to vector<16x128xi32>
      %90 = arith.cmpi eq, %84, %89 : vector<16x128xi32>
      %cst_53 = arith.constant 0.000000e+00 : f32
      %91 = vector.broadcast %cst_53 : f32 to vector<16x128xf32>
      %92 = arith.select %88, %85, %91 : vector<16x128xi1>, vector<16x128xf32>
      %cst_54 = arith.constant dense<0.000000e+00> : vector<16xf32>
      %93 = vector.multi_reduction <add>, %92, %cst_54 [1] : vector<16x128xf32> to vector<16xf32>
      %94 = vector.shape_cast %93 : vector<16xf32> to vector<16x1xf32>
      %cst_55 = arith.constant 0.000000e+00 : f32
      %95 = vector.broadcast %cst_55 : f32 to vector<16x128xf32>
      %96 = arith.select %88, %86, %95 : vector<16x128xi1>, vector<16x128xf32>
      %cst_56 = arith.constant dense<0.000000e+00> : vector<16xf32>
      %97 = vector.multi_reduction <add>, %96, %cst_56 [1] : vector<16x128xf32> to vector<16xf32>
      %98 = vector.shape_cast %97 : vector<16xf32> to vector<16x1xf32>
      %cst_57 = arith.constant 0.000000e+00 : f32
      %99 = vector.broadcast %cst_57 : f32 to vector<16x128xf32>
      %100 = arith.select %90, %85, %99 : vector<16x128xi1>, vector<16x128xf32>
      %cst_58 = arith.constant dense<0.000000e+00> : vector<16xf32>
      %101 = vector.multi_reduction <add>, %100, %cst_58 [1] : vector<16x128xf32> to vector<16xf32>
      %102 = vector.shape_cast %101 : vector<16xf32> to vector<16x1xf32>
      %cst_59 = arith.constant 0.000000e+00 : f32
      %103 = vector.broadcast %cst_59 : f32 to vector<16x128xf32>
      %104 = arith.select %90, %86, %103 : vector<16x128xi1>, vector<16x128xf32>
      %cst_60 = arith.constant dense<0.000000e+00> : vector<16xf32>
      %105 = vector.multi_reduction <add>, %104, %cst_60 [1] : vector<16x128xf32> to vector<16xf32>
      %106 = vector.shape_cast %105 : vector<16xf32> to vector<16x1xf32>
      %107 = arith.divf %94, %98 : vector<16x1xf32>
      %108 = arith.divf %102, %106 : vector<16x1xf32>
      %109 = arith.subf %108, %107 : vector<16x1xf32>
      %110 = arith.maximumf %107, %108 : vector<16x1xf32>
      %111 = arith.divf %109, %110 : vector<16x1xf32>
      %c0_61 = arith.constant 0 : index
      %c0_62 = arith.constant 0 : index
      %112 = vector.load %arg9[%c0_61, %c0_62] : memref<16x1xf32, #tpu.memory_space<vmem>>, vector<16x1xf32>
      tpu.vector_store %arg9[%c0_61, %c0_62], %111 {strides = array<i32>} : memref<16x1xf32, #tpu.memory_space<vmem>>, vector<16x1xf32>,
    } else {
    }
    return
  }
  func.func @transform_0(%arg0: i32, %arg1: i32) -> (i32, i32) {
    %c0_i32 = arith.constant 0 : i32
    %c0_i32_0 = arith.constant 0 : i32
    return %arg0, %c0_i32 : i32, i32
  }
  func.func @transform_1(%arg0: i32, %arg1: i32) -> (i32, i32) {
    %c0_i32 = arith.constant 0 : i32
    %c0_i32_0 = arith.constant 0 : i32
    return %arg1, %c0_i32 : i32, i32
  }
  func.func @transform_2(%arg0: i32, %arg1: i32) -> (i32, i32) {
    %c0_i32 = arith.constant 0 : i32
    %c0_i32_0 = arith.constant 0 : i32
    return %arg0, %c0_i32 : i32, i32
  }
  func.func @transform_3(%arg0: i32, %arg1: i32) -> (i32, i32) {
    %c0_i32 = arith.constant 0 : i32
    %c0_i32_0 = arith.constant 0 : i32
    return %c0_i32, %arg1 : i32, i32
  }
  func.func @transform_4(%arg0: i32, %arg1: i32) -> (i32, i32) {
    %c0_i32 = arith.constant 0 : i32
    %c0_i32_0 = arith.constant 0 : i32
    return %arg0, %c0_i32 : i32, i32
  }
  func.func @transform_5(%arg0: i32, %arg1: i32) -> (i32, i32) {
    %c0_i32 = arith.constant 0 : i32
    %c0_i32_0 = arith.constant 0 : i32
    return %c0_i32, %arg1 : i32, i32
  }
  func.func @transform_6(%arg0: i32, %arg1: i32) -> (i32, i32) {
    %c0_i32 = arith.constant 0 : i32
    %c0_i32_0 = arith.constant 0 : i32
    return %arg1, %c0_i32 : i32, i32
  }
  func.func @transform_7(%arg0: i32, %arg1: i32) -> (i32, i32) {
    %c0_i32 = arith.constant 0 : i32
    %c0_i32_0 = arith.constant 0 : i32
    return %arg0, %c0_i32 : i32, i32
  }
}

</mosaic_0001>

<bundles_post_ra>
// kernel: tpu_custom_call.1
= control target key start
LH: loop header
LB: loop body
LE: loop exit
PB: predicated region body
PF: predicated region fallthrough
CT: control target
= control target key end

     0   :  { %vm60_vm0 = vcmask 261120   ;;  %v484_v1 = vmov 0   ;;  %v82_v14 = vlaneseq  ;;  %vm35_vm6 = vcmask 7168   ;;  %s642_s1 = inlined_call_operand.vmem [shape: bf16[16,32], index: 1, kind: input, shape index: {}]   ;;  %s643_s4 = inlined_call_operand.vmem [shape: f32[16,1], index: 4, kind: input, shape index: {}]   ;;  %s644_s2 = inlined_call_operand.vmem [shape: s32[16,1], index: 2, kind: input, shape index: {}]   ;;  %s645_s5 = inlined_call_operand.vmem [shape: f32[1,16], index: 5, kind: input, shape index: {}]   ;;  %s646_s0 = inlined_call_operand.vmem [shape: bf16[16,32], index: 0, kind: input, shape index: {}]   ;;  %s647_s6 = inlined_call_operand.vmem [shape: f32[16,128], index: 6, kind: input, shape index: {}]   ;;  %s648_s3 = inlined_call_operand.vmem [shape: s32[1,16], index: 3, kind: input, shape index: {}]   ;;  %s649_s7 = inlined_call_operand.vmem [shape: f32[16,1], index: 7, kind: output, shape index: {}]  }
   0x1   :  { %v458_v0 = vld [vmem:[%s642_s1] sm:$0xff]  ;;  %463 = vset.pattern.permute.xlu0 %v484_v1  ;;  %464 = vset.pattern.permute.xlu1 %v484_v1  ;;  %v44_v6 = vld [vmem:[%s643_s4 + $0x8] sm:$0xff]  ;;  %vm149_vm7 = vcmask 130048   ;;  %v485_v27 = vmov inf   ;;  %v486_v29 = vmov 2147483647  }
   0x2   :  { %v43_v2 = vld [vmem:[%s643_s4] sm:$0xff]  ;;  %465 = vset.pattern.permute.xlu2 %v484_v1  ;;  %v65_v4 = vsel %vm60_vm0, %v458_v0, 0  ;;  %v41_v7 = vld [vmem:[%s644_s2 + $0x8] sm:$0xff]  ;;  %v83_v20 = vshrl.u32 %v82_v14, 7  ;;  %v567_v21 = vand.u32 127, %v82_v14  ;;  %36 = vst.msk [vmem:[#allocation4] sm:$0xff] %vm35_vm6, %v485_v27 }
   0x3   :  { %97 = vperm.xlu0 %463, %v43_v2   ;;  %v40_v3 = vld [vmem:[%s644_s2] sm:$0xff]  ;;  %74 = vmatpush.bf16.xpose.msra.mxu0 %v65_v4  ;;  %v146_v8 = vld [vmem:[%s647_s6 + $0x8] sm:$0xff]  ;;  %38 = vst.msk [vmem:[#allocation5] sm:$0xff] %vm35_vm6, %v486_v29  ;;  %v487_v37 = vmov 0.0  }
   0x4   :  { %221 = vperm.xlu1 %464, %v40_v3   ;;  %v457_v5 = vld [vmem:[%s646_s0] sm:$0xff]  ;;  %207 = vmatpush.msra.mxu2 %v146_v8  ;;  %vm93_vm4 = vcmp.eq.s32.totalorder %v567_v21, %v83_v20  ;;  %v84_v31 = vadd.s32 8, %v83_v20  ;;  %37 = vst.msk [vmem:[#allocation4 + $0x8] sm:$0xff] %vm35_vm6, %v485_v27 }
   0x5   :  { %170 = vmatpush.msra.mxu1 %v146_v8  ;;  %v145_v9 = vld [vmem:[%s647_s6] sm:$0xff]  ;;  %39 = vst.msk [vmem:[#allocation5 + $0x8] sm:$0xff] %vm35_vm6, %v486_v29 }
   0x6   :  { %208 = vmatpush.msra.mxu2 %v145_v9  ;;  %v42_v10 = vld [vmem:[%s648_s3] sm:$0x1]  ;;  %vm94_vm10 = vcmp.eq.s32.totalorder %v567_v21, %v84_v31 }
   0x7   :  { %171 = vmatpush.msra.mxu1 %v145_v9  ;;  %vm144_vm1 = vcmp.ge.s32.totalorder %v42_v10, 0  ;;  %v466_v11 = vld [vmem:[%s645_s5] ss:$0 sm:$0xff] }
   0x8   :  { %v229_v12 = vsel %vm144_vm1, 1, %v484_v1  ;;  %v563_v15 = vld [vmem:[%s648_s3] ss:$0 sm:$0xff]  ;;  %v246_v1 = vshll.u32 %v567_v21, 16 }
   0x9   :  { %v230_v16 = vperm.slane %v229_v12, 0  ;;  %v280_v2 = vld [vmem:[#allocation4] sm:$0xff] }
   0xa   :  { %452 = vmatmul.msk.bf16.vlgmr.msra.gmra.mxu0 %vm60_vm0, %v457_v5  ;;  %v247_v3 = vor.u32 %v563_v15, %v246_v1 }
   0xb   :  { %102 = vperm.xlu0 %463, %v44_v6   ;;  %vm571_vm3 = vcmp.eq.s32.totalorder %v230_v16, 1  ;;  %v281_v9 = vld [vmem:[#allocation4 + $0x8] sm:$0xff] }
   0xc   :  { %224 = vperm.xlu1 %464, %v41_v7  }
  0x75   :  { %v98_v13 = vpop.permute.xlu0 %97 }
  0x76   :  { %v108_v17 = vadd.f32 %v466_v11, %v98_v13  ;;  %v565_v18 = vpop.permute.xlu1 %221 }
  0x77   :  { %vm227_vm2 = vcmp.ne.s32.totalorder %v565_v18, %v563_v15 }
  0x78   :  { %vm232_vm5 = vmand %vm227_vm2, %vm571_vm3 }
  0x7d   :  { %v103_v26 = vpop.permute.xlu0 %102 }
  0x7e   :  { %v109_v33 = vadd.f32 %v466_v11, %v103_v26  ;;  %v581_v34 = vpop.permute.xlu1 %224 }
  0x7f   :  { %vm228_vm9 = vcmp.ne.s32.totalorder %v581_v34, %v563_v15 }
  0x80   :  { %vm233_vm11 = vmand %vm228_vm9, %vm571_vm3  ;;  %vm310_vm9 = vcmp.eq.s32.totalorder %v567_v21, %v565_v18 }
  0x87   :  { %v76_v19 = vpop.f32.mrf.mxu0 }
  0x88   :  { %v110_v22 = vmul.f32 2.0, %v76_v19 }
  0x8a   :  { %v112_v24 = vsub.f32 %v108_v17, %v110_v22 }
  0x8c   :  { %v114_v25 = vmax.f32 %v112_v24, 0.0 }
  0x8e   :  { %v116_v28 = vsel %vm93_vm4, 0.0, %v114_v25 }
  0x8f   :  { %468 = vrsqrt.f32 %v116_v28  ;;  %v78_v30 = vpop.f32.mrf.mxu0  ;;  %v234_v32 = vsel %vm232_vm5, %v116_v28, inf  ;;  %vm118_vm8 = vcmp.gt.f32.partialorder %v116_v28, 0.0  ;;  %vm127_vm13 = vcmp.eq.f32.partialorder %v116_v28, inf }
  0x90   :  { %v111_v35 = vmul.f32 2.0, %v78_v30  ;;  %v236_v36 = vsel %vm149_vm7, %v234_v32, inf  ;;  %v185_v38 = vsel %vm118_vm8, 1.0, %v487_v37  ;;  %v130_v55 = vand.u32 2147483648, %v116_v28 }
  0x91   :  { %237 = vmin.xlane.f32.xlu2 %v236_v36  ;;  %455 = vmatmul.msk.f32.vlgmr.msra.gmra.mxu2 %vm149_vm7, %v185_v38  ;;  %vm129_vm14 = vcmp.eq.f32.partialorder %v116_v28, 0.0 }
  0x92   :  { %v113_v39 = vsub.f32 %v109_v33, %v111_v35  ;;  %v282_v33 = vld [vmem:[#allocation5] sm:$0xff] }
  0x94   :  { %v115_v40 = vmax.f32 %v113_v39, 0.0 }
  0x95   :  { %v469_v41 = vpop.eup %468 }
  0x96   :  { %v117_v42 = vsel %vm94_vm10, 0.0, %v115_v40  ;;  %v121_v43 = vmul.f32 %v469_v41, %v116_v28  ;;  %vm311_vm10 = vcmp.eq.s32.totalorder %v567_v21, %v581_v34 }
  0x97   :  { %470 = vrsqrt.f32 %v117_v42  ;;  %v235_v44 = vsel %vm233_vm11, %v117_v42, inf  ;;  %vm119_vm12 = vcmp.gt.f32.partialorder %v117_v42, 0.0  ;;  %vm139_vm15 = vcmp.eq.f32.partialorder %v117_v42, inf }
  0x98   :  { %v239_v45 = vsel %vm149_vm7, %v235_v44, inf  ;;  %v186_v46 = vsel %vm119_vm12, 1.0, %v487_v37  ;;  %v122_v47 = vmul.f32 %v469_v41, %v121_v43  ;;  %v142_v62 = vand.u32 2147483648, %v117_v42 }
  0x99   :  { %240 = vmin.xlane.f32.xlu2 %v239_v45  ;;  %456 = vmatmul.msk.f32.gmra.mxu2 %vm149_vm7, %v186_v46  ;;  %vm141_vm0 = vcmp.eq.f32.partialorder %v117_v42, 0.0  ;;  %vm286_vm11 = vcmp.eq.s32.totalorder %v282_v33, 2147483647 }
  0x9a   :  { %v123_v48 = vmul.f32 0.5, %v122_v47 }
  0x9c   :  { %v124_v49 = vsub.f32 1.5, %v123_v48 }
  0x9d   :  { %v471_v50 = vpop.eup %470 }
  0x9e   :  { %v125_v51 = vmul.f32 %v469_v41, %v124_v49  ;;  %v133_v52 = vmul.f32 %v471_v50, %v117_v42  ;;  %v283_v41 = vld [vmem:[#allocation5 + $0x8] sm:$0xff] }
  0xa0   :  { %v126_v53 = vmul.f32 %v125_v51, %v116_v28  ;;  %v134_v54 = vmul.f32 %v471_v50, %v133_v52 }
  0xa2   :  { %v128_v56 = vsel %vm127_vm13, %v116_v28, %v126_v53  ;;  %v135_v57 = vmul.f32 0.5, %v134_v54  ;;  %vm287_vm13 = vcmp.eq.s32.totalorder %v283_v41, 2147483647 }
  0xa3   :  { %v131_v58 = vsel %vm129_vm14, %v130_v55, %v128_v56 }
  0xa4   :  { %453 = vmatmul.msk.f32.vlgmr.msra.gmra.mxu1 %vm149_vm7, %v131_v58  ;;  %v136_v59 = vsub.f32 1.5, %v135_v57 }
  0xa6   :  { %v137_v60 = vmul.f32 %v471_v50, %v136_v59 }
  0xa8   :  { %v138_v61 = vmul.f32 %v137_v60, %v117_v42 }
  0xaa   :  { %v140_v63 = vsel %vm139_vm15, %v117_v42, %v138_v61 }
  0xab   :  { %v143_v0 = vsel %vm141_vm0, %v142_v62, %v140_v63 }
  0xac   :  { %454 = vmatmul.msk.f32.gmra.mxu1 %vm149_vm7, %v143_v0 }
 0x104   :  { %v238_v4 = vpop.xlane.xlu2 %237 }
 0x105   :  { %vm242_vm1 = vcmp.eq.f32.partialorder %v234_v32, %v238_v4  ;;  %vm284_vm2 = vcmp.lt.f32.partialorder %v238_v4, %v280_v2  ;;  %v290_v5 = vmin.f32 %v280_v2, %v238_v4 }
 0x106   :  { %vm244_vm4 = vmand %vm242_vm1, %vm571_vm3 }
 0x107   :  { %293 = vst.msk [vmem:[#allocation4] sm:$0xff] %vm35_vm6, %v290_v5  ;;  %v248_v6 = vsel %vm244_vm4, %v247_v3, 2147483647  ;;  %vm288_vm12 = vmor %vm284_vm2, %vm286_vm11 }
 0x108   :  { %v250_v7 = vsel %vm149_vm7, %v248_v6, 2147483647 }
 0x109   :  { %v252_v8 = vshra.s32 %v250_v7, 16  ;;  %v251_v25 = vand.u32 65535, %v250_v7 }
 0x10b   :  { %v254_v10 = vcvt.s32.f32 %v252_v8  ;;  %v253_v27 = vcvt.s32.f32 %v251_v25 }
 0x10c   :  { %v241_v11 = vpop.xlane.xlu2 %240 }
 0x10d   :  { %vm243_vm5 = vcmp.eq.f32.partialorder %v235_v44, %v241_v11  ;;  %v291_v12 = vmin.f32 %v281_v9, %v241_v11  ;;  %255 = vmin.xlane.f32.xlu0 %v254_v10  ;;  %vm285_vm14 = vcmp.lt.f32.partialorder %v241_v11, %v281_v9 }
 0x10e   :  { %vm245_vm8 = vmand %vm243_vm5, %vm571_vm3 }
 0x10f   :  { %294 = vst.msk [vmem:[#allocation4 + $0x8] sm:$0xff] %vm35_vm6, %v291_v12  ;;  %v249_v13 = vsel %vm245_vm8, %v247_v3, 2147483647  ;;  %vm289_vm15 = vmor %vm285_vm14, %vm287_vm13 }
 0x110   :  { %v265_v14 = vsel %vm149_vm7, %v249_v13, 2147483647 }
 0x111   :  { %v267_v15 = vshra.s32 %v265_v14, 16  ;;  %v266_v28 = vand.u32 65535, %v265_v14 }
 0x113   :  { %v269_v16 = vcvt.s32.f32 %v267_v15  ;;  %v268_v30 = vcvt.s32.f32 %v266_v28 }
 0x114   :  { %v210_v17 = vpop.f32.mrf.mxu2 }
 0x115   :  { %270 = vmin.xlane.f32.xlu1 %v269_v16  ;;  %v326_v19 = vsel %vm310_vm9, %v210_v17, 0.0 }
 0x116   :  { %328 = vadd.xlane.f32.xlu0 %v326_v19 }
 0x11c   :  { %v213_v20 = vpop.f32.mrf.mxu2 }
 0x11d   :  { %v327_v22 = vsel %vm311_vm10, %v213_v20, 0.0 }
 0x11e   :  { %330 = vadd.xlane.f32.xlu1 %v327_v22 }
 0x121   :  { %v173_v23 = vpop.f32.mrf.mxu1 }
 0x122   :  { %v320_v24 = vsel %vm310_vm9, %v173_v23, 0.0 }
 0x126   :  { %322 = vadd.xlane.f32.xlu1 %v320_v24 }
 0x129   :  { %v176_v56 = vpop.f32.mrf.mxu1 }
 0x12a   :  { %v321_v57 = vsel %vm311_vm10, %v176_v56, 0.0 }
 0x180   :  { %v256_v26 = vpop.xlane.xlu0 %255 }
 0x181   :  { %vm257_vm3 = vcmp.eq.f32.partialorder %v254_v10, %v256_v26  ;;  %v262_v32 = vcvt.f32.s32 %v256_v26 }
 0x182   :  { %v258_v18 = vsel %vm257_vm3, %v253_v27, inf }
 0x183   :  { %259 = vmin.xlane.f32.xlu2 %v258_v18  ;;  %v263_v36 = vshll.u32 %v262_v32, 16 }
 0x188   :  { %v271_v29 = vpop.xlane.xlu1 %270 }
 0x189   :  { %vm272_vm7 = vcmp.eq.f32.partialorder %v269_v16, %v271_v29  ;;  %v277_v39 = vcvt.f32.s32 %v271_v29  ;;  %v329_v59 = vpop.xlane.xlu0 %328 }
 0x18a   :  { %v273_v31 = vsel %vm272_vm7, %v268_v30, inf  ;;  %472 = vrcp.f32 %v329_v59  ;;  %v355_v6 = vand.u32 2147483648, %v329_v59  ;;  %vm349_vm4 = vweird.f32 %v329_v59 }
 0x18b   :  { %274 = vmin.xlane.f32.xlu2 %v273_v31  ;;  %v278_v43 = vshll.u32 %v277_v39, 16  ;;  %v353_v8 = vand.u32 2147483647, %v329_v59 }
 0x18c   :  { %v356_v15 = vor.u32 1.1754944e-38, %v355_v6 }
 0x18d   :  { %vm354_vm9 = vcmp.eq.f32.partialorder %v353_v8, 8.507059e+37 }
 0x190   :  { %v473_v60 = vpop.eup %472 }
 0x191   :  { %v620_v61 = vpop.xlane.xlu1 %330  ;;  %v345_v62 = vmul.f32 %v473_v60, %v329_v59  ;;  %vm350_vm2 = vweird.f32 %v473_v60 }
 0x192   :  { %474 = vrcp.f32 %v620_v61  ;;  %vm351_vm5 = vmor %vm349_vm4, %vm350_vm2  ;;  %v370_v32 = vand.u32 2147483648, %v620_v61 }
 0x193   :  { %v346_v63 = vsub.f32 1.0, %v345_v62 }
 0x195   :  { %v347_v2 = vmul.f32 %v473_v60, %v346_v63 }
 0x197   :  { %v348_v34 = vadd.f32 %v473_v60, %v347_v2 }
 0x198   :  { %v623_v1 = vpop.eup %474 }
 0x199   :  { %v323_v7 = vpop.xlane.xlu1 %322  ;;  %v352_v12 = vsel %vm351_vm5, %v473_v60, %v348_v34  ;;  %vm365_vm11 = vweird.f32 %v623_v1 }
 0x19a   :  { %v357_v19 = vsel %vm354_vm9, %v356_v15, %v352_v12 }
 0x19b   :  { %v358_v18 = vmul.f32 %v357_v19, %v323_v7 }
 0x1f6   :  { %v260_v35 = vpop.xlane.xlu2 %259 }
 0x1f7   :  { %v261_v37 = vcvt.f32.s32 %v260_v35 }
 0x1f9   :  { %v264_v38 = vadd.s32 %v263_v36, %v261_v37  ;;  %v368_v36 = vand.u32 2147483647, %v620_v61 }
 0x1fb   :  { %v295_v40 = vsel %vm288_vm12, %v264_v38, %v282_v33  ;;  %vm364_vm12 = vweird.f32 %v620_v61 }
 0x1fc   :  { %297 = vst.msk [vmem:[#allocation5] sm:$0xff] %vm35_vm6, %v295_v40  ;;  %vm366_vm14 = vmor %vm364_vm12, %vm365_vm11  ;;  %v371_v40 = vor.u32 1.1754944e-38, %v370_v32 }
 0x1fe   :  { %v275_v42 = vpop.xlane.xlu2 %274 }
 0x1ff   :  { %v276_v44 = vcvt.f32.s32 %v275_v42 }
 0x201   :  { %v279_v45 = vadd.s32 %v278_v43, %v276_v44 }
 0x203   :  { %v296_v46 = vsel %vm289_vm15, %v279_v45, %v283_v41  ;;  %v302_v47 = vld [vmem:[#allocation5] sm:$0xff] }
 0x204   :  { %298 = vst.msk [vmem:[#allocation5 + $0x8] sm:$0xff] %vm35_vm6, %v296_v46  ;;  %v304_v48 = vand.u32 65535, %v302_v47 }
 0x206   :  { %313 = vperm.xlu2 %465, %v304_v48  }
 0x20b   :  { %v303_v49 = vld [vmem:[#allocation5 + $0x8] sm:$0xff] }
 0x20c   :  { %v305_v50 = vand.u32 65535, %v303_v49 }
 0x20e   :  { %316 = vperm.xlu2 %465, %v305_v50  }
 0x260   :  { %v314_v51 = vpop.permute.xlu2 %313 }
 0x261   :  { %vm318_vm0 = vcmp.eq.s32.totalorder %v567_v21, %v314_v51 }
 0x262   :  { %v338_v52 = vsel %vm318_vm0, %v210_v17, 0.0  ;;  %v332_v53 = vsel %vm318_vm0, %v173_v23, 0.0 }
 0x263   :  { %340 = vadd.xlane.f32.xlu2 %v338_v52  ;;  %334 = vadd.xlane.f32.xlu1 %v332_v53 }
 0x268   :  { %v317_v54 = vpop.permute.xlu2 %316 }
 0x269   :  { %vm319_vm1 = vcmp.eq.s32.totalorder %v567_v21, %v317_v54  ;;  %v360_v21 = vmul.f32 %v623_v1, %v620_v61 }
 0x26a   :  { %v339_v55 = vsel %vm319_vm1, %v213_v20, 0.0  ;;  %v333_v58 = vsel %vm319_vm1, %v176_v56, 0.0  ;;  %vm369_vm1 = vcmp.eq.f32.partialorder %v368_v36, 8.507059e+37 }
 0x26b   :  { %342 = vadd.xlane.f32.xlu0 %v339_v55  ;;  %v361_v10 = vsub.f32 1.0, %v360_v21 }
 0x26d   :  { %v362_v22 = vmul.f32 %v623_v1, %v361_v10 }
 0x26f   :  { %v363_v30 = vadd.f32 %v623_v1, %v362_v22 }
 0x271   :  { %v367_v38 = vsel %vm366_vm14, %v623_v1, %v363_v30 }
 0x272   :  { %v372_v44 = vsel %vm369_vm1, %v371_v40, %v367_v38 }
 0x273   :  { %324 = vadd.xlane.f32.xlu0 %v321_v57 }
 0x27b   :  { %336 = vadd.xlane.f32.xlu0 %v333_v58 }
 0x2d6   :  { %v341_v0 = vpop.xlane.xlu2 %340  ;;  %v335_v27 = vpop.xlane.xlu1 %334 }
 0x2d7   :  { %476 = vrcp.f32 %v341_v0  ;;  %v385_v11 = vand.u32 2147483648, %v341_v0  ;;  %v383_v14 = vand.u32 2147483647, %v341_v0  ;;  %vm379_vm10 = vweird.f32 %v341_v0 }
 0x2d9   :  { %v386_v20 = vor.u32 1.1754944e-38, %v385_v11  ;;  %vm384_vm7 = vcmp.eq.f32.partialorder %v383_v14, 8.507059e+37 }
 0x2dd   :  { %v477_v3 = vpop.eup %476 }
 0x2de   :  { %v375_v4 = vmul.f32 %v477_v3, %v341_v0  ;;  %v343_v5 = vpop.xlane.xlu0 %342  ;;  %vm380_vm8 = vweird.f32 %v477_v3 }
 0x2df   :  { %478 = vrcp.f32 %v343_v5  ;;  %vm381_vm3 = vmor %vm379_vm10, %vm380_vm8  ;;  %v400_v35 = vand.u32 2147483648, %v343_v5  ;;  %v398_v37 = vand.u32 2147483647, %v343_v5  ;;  %vm394_vm15 = vweird.f32 %v343_v5 }
 0x2e0   :  { %v376_v9 = vsub.f32 1.0, %v375_v4 }
 0x2e1   :  { %v401_v41 = vor.u32 1.1754944e-38, %v400_v35  ;;  %vm399_vm2 = vcmp.eq.f32.partialorder %v398_v37, 8.507059e+37 }
 0x2e2   :  { %v377_v13 = vmul.f32 %v477_v3, %v376_v9 }
 0x2e4   :  { %v378_v16 = vadd.f32 %v477_v3, %v377_v13 }
 0x2e5   :  { %v479_v17 = vpop.eup %478 }
 0x2e6   :  { %v382_v23 = vsel %vm381_vm3, %v477_v3, %v378_v16  ;;  %v390_v24 = vmul.f32 %v479_v17, %v343_v5  ;;  %v325_v25 = vpop.xlane.xlu0 %324  ;;  %vm395_vm13 = vweird.f32 %v479_v17 }
 0x2e7   :  { %v387_v26 = vsel %vm384_vm7, %v386_v20, %v382_v23  ;;  %vm396_vm0 = vmor %vm394_vm15, %vm395_vm13  ;;  %v373_v46 = vmul.f32 %v372_v44, %v325_v25 }
 0x2e8   :  { %v388_v28 = vmul.f32 %v387_v26, %v335_v27  ;;  %v391_v29 = vsub.f32 1.0, %v390_v24 }
 0x2ea   :  { %v406_v31 = vmax.f32 %v358_v18, %v388_v28  ;;  %v392_v33 = vmul.f32 %v479_v17, %v391_v29  ;;  %v404_v58 = vsub.f32 %v388_v28, %v358_v18 }
 0x2ec   :  { %480 = vrcp.f32 %v406_v31  ;;  %v393_v39 = vadd.f32 %v479_v17, %v392_v33  ;;  %v419_v52 = vand.u32 2147483648, %v406_v31  ;;  %v417_v54 = vand.u32 2147483647, %v406_v31 }
 0x2ed   :  { %vm413_vm5 = vweird.f32 %v406_v31 }
 0x2ee   :  { %v337_v42 = vpop.xlane.xlu0 %336  ;;  %v397_v43 = vsel %vm396_vm0, %v479_v17, %v393_v39  ;;  %v420_v56 = vor.u32 1.1754944e-38, %v419_v52  ;;  %vm418_vm9 = vcmp.eq.f32.partialorder %v417_v54, 8.507059e+37 }
 0x2ef   :  { %v402_v45 = vsel %vm399_vm2, %v401_v41, %v397_v43 }
 0x2f0   :  { %v403_v47 = vmul.f32 %v402_v45, %v337_v42 }
 0x2f2   :  { %v481_v48 = vpop.eup %480  ;;  %v407_v50 = vmax.f32 %v373_v46, %v403_v47  ;;  %v405_v34 = vsub.f32 %v403_v47, %v373_v46 }
 0x2f3   :  { %v409_v49 = vmul.f32 %v481_v48, %v406_v31  ;;  %vm414_vm4 = vweird.f32 %v481_v48 }
 0x2f4   :  { %482 = vrcp.f32 %v407_v50  ;;  %vm415_vm8 = vmor %vm413_vm5, %vm414_vm4  ;;  %v434_v0 = vand.u32 2147483648, %v407_v50  ;;  %v432_v2 = vand.u32 2147483647, %v407_v50  ;;  %vm428_vm3 = vweird.f32 %v407_v50 }
 0x2f5   :  { %v410_v51 = vsub.f32 1.0, %v409_v49 }
 0x2f6   :  { %v435_v21 = vor.u32 1.1754944e-38, %v434_v0  ;;  %vm433_vm11 = vcmp.eq.f32.partialorder %v432_v2, 8.507059e+37 }
 0x2f7   :  { %v411_v53 = vmul.f32 %v481_v48, %v410_v51 }
 0x2f9   :  { %v412_v55 = vadd.f32 %v481_v48, %v411_v53 }
 0x2fa   :  { %v483_v57 = vpop.eup %482 }
 0x2fb   :  { %v416_v59 = vsel %vm415_vm8, %v481_v48, %v412_v55  ;;  %v424_v61 = vmul.f32 %v483_v57, %v407_v50  ;;  %vm429_vm10 = vweird.f32 %v483_v57 }
 0x2fc   :  { %v421_v60 = vsel %vm418_vm9, %v420_v56, %v416_v59  ;;  %vm430_vm7 = vmor %vm428_vm3, %vm429_vm10 }
 0x2fd   :  { %v422_v62 = vmul.f32 %v421_v60, %v404_v58  ;;  %v425_v63 = vsub.f32 1.0, %v424_v61 }
 0x2ff   :  { %438 = vst.msk [vmem:[%s649_s7] sm:$0xff] %vm35_vm6, %v422_v62  ;;  %v426_v1 = vmul.f32 %v483_v57, %v425_v63 }
 0x301   :  { %v427_v3 = vadd.f32 %v483_v57, %v426_v1 }
 0x303   :  { %v431_v4 = vsel %vm430_vm7, %v483_v57, %v427_v3 }
 0x304   :  { %v436_v5 = vsel %vm433_vm11, %v435_v21, %v431_v4 }
 0x305   :  { %v437_v6 = vmul.f32 %v436_v5, %v405_v34 }
 0x307   :  { %439 = vst.msk [vmem:[%s649_s7 + $0x8] sm:$0xff] %vm35_vm6, %v437_v6 }

</bundles_post_ra>
